<compile_context>
chip_gen: v7x
topology: tpu7x:2x2x1
jax: 0.10.0
libtpu: 0.0.40
codegen_flags: <defaults>
</compile_context>

<pallas_src>
import functools

import jax
import jax.numpy as jnp
from jax.experimental import pallas as pl
from jax.experimental.pallas import tpu as pltpu

NEG_SLOPE = 0.01   # nn.LeakyReLU default negative_slope
LANE = 128         # TPU lane width; lane-dense output tiles avoid masked partial stores


def _round_up(n, m):
    return ((n + m - 1) // m) * m


def _leaky_relu(x):
    return jnp.where(x >= 0, x, NEG_SLOPE * x)


def mlp_kernel(x_ref,
               w1_ref, b1_ref,
               w2_ref, b2_ref,
               w3_ref, b3_ref,
               w4_ref, b4_ref,
               w5_ref, b5_ref,
               o_ref):
    """Whole MLP for one batch tile: 4x (Linear + LeakyReLU) + 2-class softmax head.

    Matmuls: bf16 inputs, f32 accumulation on the MXU. Bias-add / LeakyReLU / head in f32.
    Head weights were pre-folded into a lane-dense "logit difference" matrix, so
    softmax([l0, l1]) == [sigmoid(l0 - l1), sigmoid(l1 - l0)] is purely elementwise
    (VPU + EUP only, no cross-lane reductions) and the store is a full 128-lane write.
    """
    h = x_ref[...]                                            # (B, K_pad) bf16
    for w_ref, b_ref in ((w1_ref, b1_ref), (w2_ref, b2_ref),
                         (w3_ref, b3_ref), (w4_ref, b4_ref)):
        a = jnp.dot(h, w_ref[...], preferred_element_type=jnp.float32) + b_ref[...]
        h = _leaky_relu(a).astype(jnp.bfloat16)

    # d[:, 0] = l0 - l1, d[:, 1] = l1 - l0, d[:, 2:] = 0  (folded in the wrapper).
    d = jnp.dot(h, w5_ref[...], preferred_element_type=jnp.float32) + b5_ref[...]
    p = 1.0 / (1.0 + jnp.exp(-d))                             # elementwise 2-class softmax
    col = jax.lax.broadcasted_iota(jnp.int32, d.shape, 1)
    o_ref[...] = jnp.where(col < 2, p, 0.0).astype(o_ref.dtype)


def _pick_block_b(batch):
    """Largest sensible batch tile: fill the MXU while staying well under VMEM limits.

    <=512 rows: single tile rounded to a multiple of 8.
    >512 rows : 512-row tiles (multiple of 256 for the v6e/v7x MXU; double-buffered
                x/out tiles + weights stay far below v7x's 64 MiB VMEM; batch>=1024
                gives >=2 'parallel' grid steps so both v7x TensorCores get work).
    """
    if batch <= 512:
        return _round_up(batch, 8)
    return 512


@functools.partial(jax.jit, static_argnames=("block_b",))
def mlp_forward(x, params, block_b=None):
    # nn.Flatten
    x = x.reshape(x.shape[0], -1)
    batch, input_size = x.shape
    hidden = params["w1"].shape[1]
    out_size = params["w5"].shape[1]
    assert out_size == 2, "kernel implements the Softmax(dim=-1) head (output_size == 2)"

    if block_b is None:
        block_b = _pick_block_b(batch)
    batch_pad = _round_up(batch, block_b)
    k_pad = _round_up(input_size, LANE)

    # ---- param repack (kernel-friendly layout) -------------------------------------
    #  * pad layer-1 contraction dim with zero rows to the lane width
    #  * weights -> bf16 (halves weight DMA; MXU input dtype), biases stay f32
    #  * fold the 2-class softmax into a lane-dense "logit difference" head
    w1 = jnp.pad(params["w1"], ((0, k_pad - input_size), (0, 0))).astype(jnp.bfloat16)
    w2 = params["w2"].astype(jnp.bfloat16)
    w3 = params["w3"].astype(jnp.bfloat16)
    w4 = params["w4"].astype(jnp.bfloat16)
    b1, b2, b3, b4 = (params[f"b{i}"].astype(jnp.float32) for i in (1, 2, 3, 4))

    w5 = params["w5"].astype(jnp.float32)                      # (hidden, 2)
    b5 = params["b5"].astype(jnp.float32)                      # (1, 2)
    w5d = jnp.zeros((hidden, LANE), jnp.float32)
    w5d = w5d.at[:, 0].set(w5[:, 0] - w5[:, 1]).at[:, 1].set(w5[:, 1] - w5[:, 0])
    w5d = w5d.astype(jnp.bfloat16)
    b5d = jnp.zeros((1, LANE), jnp.float32)
    b5d = b5d.at[0, 0].set(b5[0, 0] - b5[0, 1]).at[0, 1].set(b5[0, 1] - b5[0, 0])

    # pad batch to a tile multiple and features to k_pad; cast activations to bf16
    xk = jnp.pad(x.astype(jnp.float32),
                 ((0, batch_pad - batch), (0, k_pad - input_size))).astype(jnp.bfloat16)

    grid_n = batch_pad // block_b

    # Weights/biases: same block every step (index 0). NOTE: they are small (~130 KB bf16),
    # so default double-buffering is harmless; pl.Buffered(1) could reclaim ~130 KB of VMEM.
    def bcast_spec(shape):
        return pl.BlockSpec(shape, lambda i: (0,) * len(shape))

    in_specs = [
        pl.BlockSpec((block_b, k_pad), lambda i: (i, 0)),       # x tile
        bcast_spec(w1.shape), bcast_spec(b1.shape),
        bcast_spec(w2.shape), bcast_spec(b2.shape),
        bcast_spec(w3.shape), bcast_spec(b3.shape),
        bcast_spec(w4.shape), bcast_spec(b4.shape),
        bcast_spec(w5d.shape), bcast_spec(b5d.shape),
    ]
    out_specs = pl.BlockSpec((block_b, LANE), lambda i: (i, 0))  # lane-dense output

    flops = 2 * batch_pad * (k_pad * hidden + 3 * hidden * hidden + hidden * LANE)
    weight_bytes = 2 * (k_pad * hidden + 3 * hidden * hidden + hidden * LANE)
    bias_bytes = 4 * (4 * hidden + LANE)
    cost = pl.CostEstimate(
        flops=int(flops),
        transcendentals=int(batch_pad * LANE),
        bytes_accessed=int(batch_pad * k_pad * 2            # x (bf16)
                           + batch_pad * LANE * 4           # padded output (f32)
                           + grid_n * (weight_bytes + bias_bytes)),
    )

    out_padded = pl.pallas_call(
        mlp_kernel,
        out_shape=jax.ShapeDtypeStruct((batch_pad, LANE), jnp.float32),
        grid_spec=pltpu.PrefetchScalarGridSpec(
            num_scalar_prefetch=0,
            grid=(grid_n,),
            in_specs=in_specs,
            out_specs=out_specs,
        ),
        compiler_params=pltpu.CompilerParams(
            dimension_semantics=("parallel",)),
        cost_estimate=cost,
    )(xk, w1, b1, w2, b2, w3, b3, w4, b4, w5d, b5d)

    return out_padded[:batch, :out_size]


def init_params(key, input_size, layer_size, output_size):
    """Deterministic init mimicking nn.Linear default (U[-1/sqrt(fan_in), +1/sqrt(fan_in)])."""
    def linear(k, fan_in, fan_out):
        kw, kb = jax.random.split(k)
        bound = 1.0 / jnp.sqrt(float(fan_in))
        w = jax.random.uniform(kw, (fan_in, fan_out), jnp.float32, -bound, bound)
        b = jax.random.uniform(kb, (1, fan_out), jnp.float32, -bound, bound)
        return w, b

    k1, k2, k3, k4, k5 = jax.random.split(key, 5)
    w1, b1 = linear(k1, input_size, layer_size)
    w2, b2 = linear(k2, layer_size, layer_size)
    w3, b3 = linear(k3, layer_size, layer_size)
    w4, b4 = linear(k4, layer_size, layer_size)
    w5, b5 = linear(k5, layer_size, output_size)
    return dict(w1=w1, b1=b1, w2=w2, b2=b2, w3=w3, b3=b3,
                w4=w4, b4=b4, w5=w5, b5=b5)


def reference_forward(x, p):
    """Pure f32 JAX reference matching the PyTorch module."""
    h = x.reshape(x.shape[0], -1)
    for i in (1, 2, 3, 4):
        h = _leaky_relu(h @ p[f"w{i}"] + p[f"b{i}"])
    logits = h @ p["w5"] + p["b5"]
    return jax.nn.softmax(logits, axis=-1)


if __name__ == "__main__":
    # NeuralNetwork(input_size=32, output_size=2, layer_size=128, layer_cnt=4); batch=8.
    batch, input_size, layer_size, output_size = 8, 32, 128, 2

    key = jax.random.PRNGKey(0)
    kx, kp = jax.random.split(key)
    x = jax.random.normal(kx, (batch, input_size), jnp.float32)
    params = init_params(kp, input_size, layer_size, output_size)

    out = jax.block_until_ready(mlp_forward(x, params))
    ref = reference_forward(x, params)

    assert out.shape == (batch, output_size)
    # Each row is an exact (p, 1-p) probability pair.
    assert jnp.allclose(out.sum(axis=-1), 1.0, atol=1e-5), "rows do not sum to 1"
    # bf16 matmuls (f32 accumulation) vs the pure-f32 reference.
    assert jnp.allclose(out, ref, atol=2e-2), "mismatch vs reference"

    print("KERNEL_OK")
</pallas_src>

<mosaic_0001>
module attributes {stable_mosaic.version = 11 : i64} {
  func.func @mlp_kernel(%arg0: i32, %arg1: memref<8x128xbf16, #tpu.memory_space<vmem>>, %arg2: memref<128x128xbf16, #tpu.memory_space<vmem>>, %arg3: memref<1x128xf32, #tpu.memory_space<vmem>>, %arg4: memref<128x128xbf16, #tpu.memory_space<vmem>>, %arg5: memref<1x128xf32, #tpu.memory_space<vmem>>, %arg6: memref<128x128xbf16, #tpu.memory_space<vmem>>, %arg7: memref<1x128xf32, #tpu.memory_space<vmem>>, %arg8: memref<128x128xbf16, #tpu.memory_space<vmem>>, %arg9: memref<1x128xf32, #tpu.memory_space<vmem>>, %arg10: memref<128x128xbf16, #tpu.memory_space<vmem>>, %arg11: memref<1x128xf32, #tpu.memory_space<vmem>>, %arg12: memref<8x128xf32, #tpu.memory_space<vmem>>) attributes {dimension_semantics = [#tpu.dimension_semantics<parallel>], iteration_bounds = array<i64: 1>, scalar_prefetch = 0 : i64, scratch_operands = 0 : i64, tpu.core_type = #tpu.core_type<tc>, window_params = [{transform_indices = @transform_0, window_bounds = array<i64: 8, 128>}, {pipeline_mode = #tpu.pipeline_mode<synchronous>, transform_indices = @transform_1, window_bounds = array<i64: 128, 128>}, {pipeline_mode = #tpu.pipeline_mode<synchronous>, transform_indices = @transform_2, window_bounds = array<i64: 1, 128>}, {pipeline_mode = #tpu.pipeline_mode<synchronous>, transform_indices = @transform_3, window_bounds = array<i64: 128, 128>}, {pipeline_mode = #tpu.pipeline_mode<synchronous>, transform_indices = @transform_4, window_bounds = array<i64: 1, 128>}, {pipeline_mode = #tpu.pipeline_mode<synchronous>, transform_indices = @transform_5, window_bounds = array<i64: 128, 128>}, {pipeline_mode = #tpu.pipeline_mode<synchronous>, transform_indices = @transform_6, window_bounds = array<i64: 1, 128>}, {pipeline_mode = #tpu.pipeline_mode<synchronous>, transform_indices = @transform_7, window_bounds = array<i64: 128, 128>}, {pipeline_mode = #tpu.pipeline_mode<synchronous>, transform_indices = @transform_8, window_bounds = array<i64: 1, 128>}, {pipeline_mode = #tpu.pipeline_mode<synchronous>, transform_indices = @transform_9, window_bounds = array<i64: 128, 128>}, {pipeline_mode = #tpu.pipeline_mode<synchronous>, transform_indices = @transform_10, window_bounds = array<i64: 1, 128>}, {transform_indices = @transform_11, window_bounds = array<i64: 8, 128>}]} {
    %c0 = arith.constant 0 : index
    %c0_0 = arith.constant 0 : index
    %0 = vector.load %arg1[%c0, %c0_0] : memref<8x128xbf16, #tpu.memory_space<vmem>>, vector<8x128xbf16>
    %c0_1 = arith.constant 0 : index
    %c0_2 = arith.constant 0 : index
    %1 = vector.load %arg2[%c0_1, %c0_2] : memref<128x128xbf16, #tpu.memory_space<vmem>>, vector<128x128xbf16>
    %cst = arith.constant dense<0.000000e+00> : vector<8x128xf32>
    %2 = tpu.matmul %0, %1, %cst {dimension_numbers = #tpu.dot_dimension_numbers<[1], [0], [0], [1], [0, 0, 1, 1], [], []>} : vector<8x128xbf16>, vector<128x128xbf16>, vector<8x128xf32> -> vector<8x128xf32>
    %c0_3 = arith.constant 0 : index
    %c0_4 = arith.constant 0 : index
    %3 = vector.load %arg3[%c0_3, %c0_4] : memref<1x128xf32, #tpu.memory_space<vmem>>, vector<1x128xf32>
    %4 = vector.broadcast %3 : vector<1x128xf32> to vector<8x128xf32>
    %5 = arith.addf %2, %4 : vector<8x128xf32>
    %cst_5 = arith.constant 0.000000e+00 : f32
    %6 = vector.broadcast %cst_5 : f32 to vector<8x128xf32>
    %7 = arith.cmpf oge, %5, %6 : vector<8x128xf32>
    %cst_6 = arith.constant 0.00999999977 : f32
    %8 = vector.broadcast %cst_6 : f32 to vector<8x128xf32>
    %9 = arith.mulf %8, %5 : vector<8x128xf32>
    %10 = arith.select %7, %5, %9 : vector<8x128xi1>, vector<8x128xf32>
    %11 = arith.truncf %10 : vector<8x128xf32> to vector<8x128xbf16>
    %c0_7 = arith.constant 0 : index
    %c0_8 = arith.constant 0 : index
    %12 = vector.load %arg4[%c0_7, %c0_8] : memref<128x128xbf16, #tpu.memory_space<vmem>>, vector<128x128xbf16>
    %cst_9 = arith.constant dense<0.000000e+00> : vector<8x128xf32>
    %13 = tpu.matmul %11, %12, %cst_9 {dimension_numbers = #tpu.dot_dimension_numbers<[1], [0], [0], [1], [0, 0, 1, 1], [], []>} : vector<8x128xbf16>, vector<128x128xbf16>, vector<8x128xf32> -> vector<8x128xf32>
    %c0_10 = arith.constant 0 : index
    %c0_11 = arith.constant 0 : index
    %14 = vector.load %arg5[%c0_10, %c0_11] : memref<1x128xf32, #tpu.memory_space<vmem>>, vector<1x128xf32>
    %15 = vector.broadcast %14 : vector<1x128xf32> to vector<8x128xf32>
    %16 = arith.addf %13, %15 : vector<8x128xf32>
    %cst_12 = arith.constant 0.000000e+00 : f32
    %17 = vector.broadcast %cst_12 : f32 to vector<8x128xf32>
    %18 = arith.cmpf oge, %16, %17 : vector<8x128xf32>
    %cst_13 = arith.constant 0.00999999977 : f32
    %19 = vector.broadcast %cst_13 : f32 to vector<8x128xf32>
    %20 = arith.mulf %19, %16 : vector<8x128xf32>
    %21 = arith.select %18, %16, %20 : vector<8x128xi1>, vector<8x128xf32>
    %22 = arith.truncf %21 : vector<8x128xf32> to vector<8x128xbf16>
    %c0_14 = arith.constant 0 : index
    %c0_15 = arith.constant 0 : index
    %23 = vector.load %arg6[%c0_14, %c0_15] : memref<128x128xbf16, #tpu.memory_space<vmem>>, vector<128x128xbf16>
    %cst_16 = arith.constant dense<0.000000e+00> : vector<8x128xf32>
    %24 = tpu.matmul %22, %23, %cst_16 {dimension_numbers = #tpu.dot_dimension_numbers<[1], [0], [0], [1], [0, 0, 1, 1], [], []>} : vector<8x128xbf16>, vector<128x128xbf16>, vector<8x128xf32> -> vector<8x128xf32>
    %c0_17 = arith.constant 0 : index
    %c0_18 = arith.constant 0 : index
    %25 = vector.load %arg7[%c0_17, %c0_18] : memref<1x128xf32, #tpu.memory_space<vmem>>, vector<1x128xf32>
    %26 = vector.broadcast %25 : vector<1x128xf32> to vector<8x128xf32>
    %27 = arith.addf %24, %26 : vector<8x128xf32>
    %cst_19 = arith.constant 0.000000e+00 : f32
    %28 = vector.broadcast %cst_19 : f32 to vector<8x128xf32>
    %29 = arith.cmpf oge, %27, %28 : vector<8x128xf32>
    %cst_20 = arith.constant 0.00999999977 : f32
    %30 = vector.broadcast %cst_20 : f32 to vector<8x128xf32>
    %31 = arith.mulf %30, %27 : vector<8x128xf32>
    %32 = arith.select %29, %27, %31 : vector<8x128xi1>, vector<8x128xf32>
    %33 = arith.truncf %32 : vector<8x128xf32> to vector<8x128xbf16>
    %c0_21 = arith.constant 0 : index
    %c0_22 = arith.constant 0 : index
    %34 = vector.load %arg8[%c0_21, %c0_22] : memref<128x128xbf16, #tpu.memory_space<vmem>>, vector<128x128xbf16>
    %cst_23 = arith.constant dense<0.000000e+00> : vector<8x128xf32>
    %35 = tpu.matmul %33, %34, %cst_23 {dimension_numbers = #tpu.dot_dimension_numbers<[1], [0], [0], [1], [0, 0, 1, 1], [], []>} : vector<8x128xbf16>, vector<128x128xbf16>, vector<8x128xf32> -> vector<8x128xf32>
    %c0_24 = arith.constant 0 : index
    %c0_25 = arith.constant 0 : index
    %36 = vector.load %arg9[%c0_24, %c0_25] : memref<1x128xf32, #tpu.memory_space<vmem>>, vector<1x128xf32>
    %37 = vector.broadcast %36 : vector<1x128xf32> to vector<8x128xf32>
    %38 = arith.addf %35, %37 : vector<8x128xf32>
    %cst_26 = arith.constant 0.000000e+00 : f32
    %39 = vector.broadcast %cst_26 : f32 to vector<8x128xf32>
    %40 = arith.cmpf oge, %38, %39 : vector<8x128xf32>
    %cst_27 = arith.constant 0.00999999977 : f32
    %41 = vector.broadcast %cst_27 : f32 to vector<8x128xf32>
    %42 = arith.mulf %41, %38 : vector<8x128xf32>
    %43 = arith.select %40, %38, %42 : vector<8x128xi1>, vector<8x128xf32>
    %44 = arith.truncf %43 : vector<8x128xf32> to vector<8x128xbf16>
    %c0_28 = arith.constant 0 : index
    %c0_29 = arith.constant 0 : index
    %45 = vector.load %arg10[%c0_28, %c0_29] : memref<128x128xbf16, #tpu.memory_space<vmem>>, vector<128x128xbf16>
    %cst_30 = arith.constant dense<0.000000e+00> : vector<8x128xf32>
    %46 = tpu.matmul %44, %45, %cst_30 {dimension_numbers = #tpu.dot_dimension_numbers<[1], [0], [0], [1], [0, 0, 1, 1], [], []>} : vector<8x128xbf16>, vector<128x128xbf16>, vector<8x128xf32> -> vector<8x128xf32>
    %c0_31 = arith.constant 0 : index
    %c0_32 = arith.constant 0 : index
    %47 = vector.load %arg11[%c0_31, %c0_32] : memref<1x128xf32, #tpu.memory_space<vmem>>, vector<1x128xf32>
    %48 = vector.broadcast %47 : vector<1x128xf32> to vector<8x128xf32>
    %49 = arith.addf %46, %48 : vector<8x128xf32>
    %cst_33 = arith.constant 0.000000e+00 : f32
    %50 = vector.broadcast %cst_33 : f32 to vector<8x128xf32>
    %51 = arith.subf %50, %49 : vector<8x128xf32>
    %52 = math.exp %51 : vector<8x128xf32>
    %cst_34 = arith.constant 1.000000e+00 : f32
    %53 = vector.broadcast %cst_34 : f32 to vector<8x128xf32>
    %54 = arith.addf %53, %52 : vector<8x128xf32>
    %cst_35 = arith.constant 1.000000e+00 : f32
    %55 = vector.broadcast %cst_35 : f32 to vector<8x128xf32>
    %56 = arith.divf %55, %54 : vector<8x128xf32>
    %57 = tpu.iota {dimensions = array<i32: 1>} : vector<8x128xi32>
    %c2_i32 = arith.constant 2 : i32
    %58 = vector.broadcast %c2_i32 : i32 to vector<8x128xi32>
    %59 = arith.cmpi slt, %57, %58 : vector<8x128xi32>
    %cst_36 = arith.constant 0.000000e+00 : f32
    %60 = vector.broadcast %cst_36 : f32 to vector<8x128xf32>
    %61 = arith.select %59, %56, %60 : vector<8x128xi1>, vector<8x128xf32>
    %c0_37 = arith.constant 0 : index
    %c0_38 = arith.constant 0 : index
    %62 = vector.load %arg12[%c0_37, %c0_38] : memref<8x128xf32, #tpu.memory_space<vmem>>, vector<8x128xf32>
    tpu.vector_store %arg12[%c0_37, %c0_38], %61 {strides = array<i32>} : memref<8x128xf32, #tpu.memory_space<vmem>>, vector<8x128xf32>,
    return
  }
  func.func @transform_0(%arg0: i32) -> (i32, i32) {
    %c0_i32 = arith.constant 0 : i32
    %c0_i32_0 = arith.constant 0 : i32
    return %arg0, %c0_i32 : i32, i32
  }
  func.func @transform_1(%arg0: i32) -> (i32, i32) {
    %c0_i32 = arith.constant 0 : i32
    %c0_i32_0 = arith.constant 0 : i32
    %c0_i32_1 = arith.constant 0 : i32
    return %c0_i32, %c0_i32_0 : i32, i32
  }
  func.func @transform_2(%arg0: i32) -> (i32, i32) {
    %c0_i32 = arith.constant 0 : i32
    %c0_i32_0 = arith.constant 0 : i32
    %c0_i32_1 = arith.constant 0 : i32
    return %c0_i32, %c0_i32_0 : i32, i32
  }
  func.func @transform_3(%arg0: i32) -> (i32, i32) {
    %c0_i32 = arith.constant 0 : i32
    %c0_i32_0 = arith.constant 0 : i32
    %c0_i32_1 = arith.constant 0 : i32
    return %c0_i32, %c0_i32_0 : i32, i32
  }
  func.func @transform_4(%arg0: i32) -> (i32, i32) {
    %c0_i32 = arith.constant 0 : i32
    %c0_i32_0 = arith.constant 0 : i32
    %c0_i32_1 = arith.constant 0 : i32
    return %c0_i32, %c0_i32_0 : i32, i32
  }
  func.func @transform_5(%arg0: i32) -> (i32, i32) {
    %c0_i32 = arith.constant 0 : i32
    %c0_i32_0 = arith.constant 0 : i32
    %c0_i32_1 = arith.constant 0 : i32
    return %c0_i32, %c0_i32_0 : i32, i32
  }
  func.func @transform_6(%arg0: i32) -> (i32, i32) {
    %c0_i32 = arith.constant 0 : i32
    %c0_i32_0 = arith.constant 0 : i32
    %c0_i32_1 = arith.constant 0 : i32
    return %c0_i32, %c0_i32_0 : i32, i32
  }
  func.func @transform_7(%arg0: i32) -> (i32, i32) {
    %c0_i32 = arith.constant 0 : i32
    %c0_i32_0 = arith.constant 0 : i32
    %c0_i32_1 = arith.constant 0 : i32
    return %c0_i32, %c0_i32_0 : i32, i32
  }
  func.func @transform_8(%arg0: i32) -> (i32, i32) {
    %c0_i32 = arith.constant 0 : i32
    %c0_i32_0 = arith.constant 0 : i32
    %c0_i32_1 = arith.constant 0 : i32
    return %c0_i32, %c0_i32_0 : i32, i32
  }
  func.func @transform_9(%arg0: i32) -> (i32, i32) {
    %c0_i32 = arith.constant 0 : i32
    %c0_i32_0 = arith.constant 0 : i32
    %c0_i32_1 = arith.constant 0 : i32
    return %c0_i32, %c0_i32_0 : i32, i32
  }
  func.func @transform_10(%arg0: i32) -> (i32, i32) {
    %c0_i32 = arith.constant 0 : i32
    %c0_i32_0 = arith.constant 0 : i32
    %c0_i32_1 = arith.constant 0 : i32
    return %c0_i32, %c0_i32_0 : i32, i32
  }
  func.func @transform_11(%arg0: i32) -> (i32, i32) {
    %c0_i32 = arith.constant 0 : i32
    %c0_i32_0 = arith.constant 0 : i32
    return %arg0, %c0_i32 : i32, i32
  }
}

</mosaic_0001>

<bundles_post_ra>
// kernel: mlp_forward.1
= control target key start
LH: loop header
LB: loop body
LE: loop exit
PB: predicated region body
PF: predicated region fallthrough
CT: control target
= control target key end

     0   :  { %v862_v0 = vmov 0.0   ;;  %vm863_vm0 = vmmov 0   ;;  %s1115_s1 = inlined_call_operand.vmem [shape: bf16[128,128], index: 1, kind: input, shape index: {}]   ;;  %s1116_s3 = inlined_call_operand.vmem [shape: bf16[128,128], index: 3, kind: input, shape index: {}]   ;;  %s1117_s0 = inlined_call_operand.vmem [shape: bf16[8,128], index: 0, kind: input, shape index: {}]   ;;  %s1118_s5 = inlined_call_operand.vmem [shape: bf16[128,128], index: 5, kind: input, shape index: {}]   ;;  %s1119_s2 = inlined_call_operand.vmem [shape: f32[1,128], index: 2, kind: input, shape index: {}]   ;;  %s1120_s7 = inlined_call_operand.vmem [shape: bf16[128,128], index: 7, kind: input, shape index: {}]   ;;  %s1121_s4 = inlined_call_operand.vmem [shape: f32[1,128], index: 4, kind: input, shape index: {}]   ;;  %s1122_s9 = inlined_call_operand.vmem [shape: bf16[128,128], index: 9, kind: input, shape index: {}]   ;;  %s1123_s6 = inlined_call_operand.vmem [shape: f32[1,128], index: 6, kind: input, shape index: {}]   ;;  %s1124_s8 = inlined_call_operand.vmem [shape: f32[1,128], index: 8, kind: input, shape index: {}]   ;;  %s1125_s10 = inlined_call_operand.vmem [shape: f32[1,128], index: 10, kind: input, shape index: {}]   ;;  %s1126_s11 = inlined_call_operand.vmem [shape: f32[8,128], index: 11, kind: output, shape index: {}]  }
   0x1   :  { %716 = vmatprep.subr.bf16.mxu0 %v862_v0  ;;  %v818_v1 = vld [vmem:[%s1115_s1] sm:$0xff]   ;;  %732 = vmatprep.mubr.msk.bf16.mxu0 %vm863_vm0, %v862_v0  ;;  %v819_v2 = vld [vmem:[%s1115_s1 + $0x8] sm:$0xff]   ;;  %v820_v3 = vld [vmem:[%s1115_s1 + $0x10] sm:$0xff]  }
   0x2   :  { %736 = vmatprep.subr.bf16.mxu1 %v862_v0  ;;  %752 = vmatprep.mubr.msk.bf16.mxu1 %vm863_vm0, %v862_v0  ;;  %v826_v4 = vld [vmem:[%s1116_s3] sm:$0xff]   ;;  %v821_v5 = vld [vmem:[%s1115_s1 + $0x18] sm:$0xff]   ;;  %v827_v6 = vld [vmem:[%s1116_s3 + $0x8] sm:$0xff]  }
   0x3   :  { %717 = vmatpush3.bf16.msra.mxu0 %v818_v1  ;;  %737 = vmatpush3.bf16.msra.mxu1 %v826_v4  ;;  %v822_v7 = vld [vmem:[%s1115_s1 + $0x20] sm:$0xff]   ;;  %v828_v8 = vld [vmem:[%s1116_s3 + $0x10] sm:$0xff]   ;;  %v823_v9 = vld [vmem:[%s1115_s1 + $0x28] sm:$0xff]  }
   0x4   :  { %718 = vmatprep.subr.bf16.mxu0 %v862_v0  ;;  %738 = vmatprep.subr.bf16.mxu1 %v862_v0  ;;  %v829_v10 = vld [vmem:[%s1116_s3 + $0x18] sm:$0xff]   ;;  %v824_v11 = vld [vmem:[%s1115_s1 + $0x30] sm:$0xff]   ;;  %v830_v12 = vld [vmem:[%s1116_s3 + $0x20] sm:$0xff]  }
   0x5   :  { %v825_v13 = vld [vmem:[%s1115_s1 + $0x38] sm:$0xff]   ;;  %v831_v14 = vld [vmem:[%s1116_s3 + $0x28] sm:$0xff]   ;;  %v39_v15 = vld [vmem:[%s1117_s0] sm:$0xf] }
   0x6   :  { %v832_v16 = vld [vmem:[%s1116_s3 + $0x30] sm:$0xff]   ;;  %v833_v17 = vld [vmem:[%s1116_s3 + $0x38] sm:$0xff]   ;;  %v834_v18 = vld [vmem:[%s1118_s5] sm:$0xff]  }
   0x7   :  { %719 = vmatpush3.bf16.msra.mxu0 %v819_v2  ;;  %739 = vmatpush3.bf16.msra.mxu1 %v827_v6  ;;  %v835_v19 = vld [vmem:[%s1118_s5 + $0x8] sm:$0xff]   ;;  %v836_v20 = vld [vmem:[%s1118_s5 + $0x10] sm:$0xff]   ;;  %v837_v21 = vld [vmem:[%s1118_s5 + $0x18] sm:$0xff]  }
   0x8   :  { %720 = vmatprep.subr.bf16.mxu0 %v862_v0  ;;  %740 = vmatprep.subr.bf16.mxu1 %v862_v0  ;;  %v838_v22 = vld [vmem:[%s1118_s5 + $0x20] sm:$0xff]   ;;  %v839_v23 = vld [vmem:[%s1118_s5 + $0x28] sm:$0xff]   ;;  %v840_v33 = vld [vmem:[%s1118_s5 + $0x30] sm:$0xff]  }
   0x9   :  { %v626_v24 = vld [vmem:[%s1119_s2] ss:$0 sm:$0xff]  ;;  %v841_v34 = vld [vmem:[%s1118_s5 + $0x38] sm:$0xff]   ;;  %v843_v36 = vld [vmem:[%s1120_s7 + $0x8] sm:$0xff]  }
   0xa   :  { %v842_v35 = vld [vmem:[%s1120_s7] sm:$0xff]   ;;  %v844_v37 = vld [vmem:[%s1120_s7 + $0x10] sm:$0xff]   ;;  %v845_v38 = vld [vmem:[%s1120_s7 + $0x18] sm:$0xff]  }
   0xb   :  { %721 = vmatpush3.bf16.msra.mxu0 %v820_v3  ;;  %741 = vmatpush3.bf16.msra.mxu1 %v828_v8  ;;  %v846_v39 = vld [vmem:[%s1120_s7 + $0x20] sm:$0xff]   ;;  %v847_v40 = vld [vmem:[%s1120_s7 + $0x28] sm:$0xff]   ;;  %v848_v50 = vld [vmem:[%s1120_s7 + $0x30] sm:$0xff]  }
   0xc   :  { %722 = vmatprep.subr.bf16.mxu0 %v862_v0  ;;  %742 = vmatprep.subr.bf16.mxu1 %v862_v0  ;;  %v635_v41 = vld [vmem:[%s1121_s4] ss:$0 sm:$0xff]  ;;  %v849_v51 = vld [vmem:[%s1120_s7 + $0x38] sm:$0xff]   ;;  %v851_v53 = vld [vmem:[%s1122_s9 + $0x8] sm:$0xff]  }
   0xd   :  { %v850_v52 = vld [vmem:[%s1122_s9] sm:$0xff]   ;;  %v852_v54 = vld [vmem:[%s1122_s9 + $0x10] sm:$0xff]   ;;  %v853_v55 = vld [vmem:[%s1122_s9 + $0x18] sm:$0xff]  }
   0xe   :  { %v854_v56 = vld [vmem:[%s1122_s9 + $0x20] sm:$0xff]   ;;  %v855_v57 = vld [vmem:[%s1122_s9 + $0x28] sm:$0xff]   ;;  %v856_v4 = vld [vmem:[%s1122_s9 + $0x30] sm:$0xff]  }
   0xf   :  { %723 = vmatpush3.bf16.msra.mxu0 %v821_v5  ;;  %743 = vmatpush3.bf16.msra.mxu1 %v829_v10  ;;  %v644_v58 = vld [vmem:[%s1123_s6] ss:$0 sm:$0xff]  ;;  %v857_v5 = vld [vmem:[%s1122_s9 + $0x38] sm:$0xff]  }
  0x10   :  { %724 = vmatprep.subr.bf16.mxu0 %v862_v0  ;;  %744 = vmatprep.subr.bf16.mxu1 %v862_v0  ;;  %v653_v6 = vld [vmem:[%s1124_s8] ss:$0 sm:$0xff] }
  0x13   :  { %725 = vmatpush3.bf16.msra.mxu0 %v822_v7  ;;  %745 = vmatpush3.bf16.msra.mxu1 %v830_v12 }
  0x14   :  { %726 = vmatprep.subr.bf16.mxu0 %v862_v0  ;;  %746 = vmatprep.subr.bf16.mxu1 %v862_v0 }
  0x17   :  { %727 = vmatpush3.bf16.msra.mxu0 %v823_v9  ;;  %747 = vmatpush3.bf16.msra.mxu1 %v831_v14 }
  0x18   :  { %728 = vmatprep.subr.bf16.mxu0 %v862_v0  ;;  %748 = vmatprep.subr.bf16.mxu1 %v862_v0 }
  0x1b   :  { %729 = vmatpush3.bf16.msra.mxu0 %v824_v11  ;;  %749 = vmatpush3.bf16.msra.mxu1 %v832_v16 }
  0x1c   :  { %730 = vmatprep.subr.bf16.mxu0 %v862_v0  ;;  %750 = vmatprep.subr.bf16.mxu1 %v862_v0 }
  0x1f   :  { %731 = vmatpush3.bf16.msra.mxu0 %v825_v13  ;;  %751 = vmatpush3.bf16.msra.mxu1 %v833_v17 }
  0x20   :  { %756 = vmatprep.subr.bf16.mxu0 %v862_v0  ;;  %776 = vmatprep.subr.bf16.mxu1 %v862_v0 }
  0x22   :  { %733 = vmatmul.mubr.bf16.vlgmr.msra.gmra.mrb[0].mxu0 %v39_v15 }
  0x23   :  { %772 = vmatprep.mubr.msk.bf16.mxu0 %vm863_vm0, %v862_v0  ;;  %757 = vmatpush3.bf16.msra.mxu0 %v834_v18 }
  0x24   :  { %758 = vmatprep.subr.bf16.mxu0 %v862_v0 }
  0x27   :  { %759 = vmatpush3.bf16.msra.mxu0 %v835_v19 }
  0x28   :  { %760 = vmatprep.subr.bf16.mxu0 %v862_v0 }
  0x2b   :  { %761 = vmatpush3.bf16.msra.mxu0 %v836_v20 }
  0x2c   :  { %762 = vmatprep.subr.bf16.mxu0 %v862_v0 }
  0x2f   :  { %763 = vmatpush3.bf16.msra.mxu0 %v837_v21 }
  0x30   :  { %764 = vmatprep.subr.bf16.mxu0 %v862_v0 }
  0x33   :  { %765 = vmatpush3.bf16.msra.mxu0 %v838_v22 }
  0x34   :  { %766 = vmatprep.subr.bf16.mxu0 %v862_v0 }
  0x37   :  { %767 = vmatpush3.bf16.msra.mxu0 %v839_v23 }
  0x38   :  { %768 = vmatprep.subr.bf16.mxu0 %v862_v0 }
  0x3b   :  { %769 = vmatpush3.bf16.msra.mxu0 %v840_v33 }
  0x3c   :  { %770 = vmatprep.subr.bf16.mxu0 %v862_v0 }
  0x3f   :  { %771 = vmatpush3.bf16.msra.mxu0 %v841_v34 }
  0x40   :  { %796 = vmatprep.subr.bf16.mxu0 %v862_v0 }
  0xf5   :  { %v145_v25 = vpop.f32.mrb[0].mxu0 }
  0xf6   :  { %v146_v26 = vadd.f32 %v626_v24, %v145_v25  ;;  %v734_v27 = vpop.f32.mrb[1].mxu0  ;;  %v617_v24 = vlaneseq }
  0xf7   :  { %v148_v28 = vpop.f32.mrb[2].mxu0 }
  0xf8   :  { %vm151_vm1 = vcmp.ge.f32.partialorder %v146_v26, 0.0  ;;  %v152_v29 = vmul.f32 0.01, %v146_v26  ;;  %v735_v30 = vpop.f32.mrb[3].mxu0  ;;  %v618_v25 = vand.u32 127, %v617_v24 }
  0xfa   :  { %v153_v31 = vsel %vm151_vm1, %v146_v26, %v152_v29  ;;  %vm619_vm5 = vcmp.lt.s32.totalorder %v618_v25, 2 }
  0xfb   :  { %v154_v32 = vpack.c.bf16 %v153_v31, %v153_v31 }
  0xfd   :  { %753 = vmatmul.mubr.bf16.vlgmr.msra.gmra.mrb[0].mxu1 %v154_v32 }
  0xfe   :  { %792 = vmatprep.mubr.msk.bf16.mxu1 %vm863_vm0, %v862_v0  ;;  %777 = vmatpush3.bf16.msra.mxu1 %v842_v35 }
  0xff   :  { %778 = vmatprep.subr.bf16.mxu1 %v862_v0 }
 0x102   :  { %779 = vmatpush3.bf16.msra.mxu1 %v843_v36 }
 0x103   :  { %780 = vmatprep.subr.bf16.mxu1 %v862_v0 }
 0x106   :  { %781 = vmatpush3.bf16.msra.mxu1 %v844_v37 }
 0x107   :  { %782 = vmatprep.subr.bf16.mxu1 %v862_v0 }
 0x10a   :  { %783 = vmatpush3.bf16.msra.mxu1 %v845_v38 }
 0x10b   :  { %784 = vmatprep.subr.bf16.mxu1 %v862_v0 }
 0x10e   :  { %785 = vmatpush3.bf16.msra.mxu1 %v846_v39 }
 0x10f   :  { %786 = vmatprep.subr.bf16.mxu1 %v862_v0 }
 0x112   :  { %787 = vmatpush3.bf16.msra.mxu1 %v847_v40 }
 0x113   :  { %788 = vmatprep.subr.bf16.mxu1 %v862_v0 }
 0x116   :  { %789 = vmatpush3.bf16.msra.mxu1 %v848_v50 }
 0x117   :  { %790 = vmatprep.subr.bf16.mxu1 %v862_v0 }
 0x11a   :  { %791 = vmatpush3.bf16.msra.mxu1 %v849_v51 }
 0x1d0   :  { %v260_v42 = vpop.f32.mrb[0].mxu1 }
 0x1d1   :  { %v261_v43 = vadd.f32 %v635_v41, %v260_v42  ;;  %v754_v44 = vpop.f32.mrb[1].mxu1 }
 0x1d2   :  { %v263_v45 = vpop.f32.mrb[2].mxu1 }
 0x1d3   :  { %vm266_vm2 = vcmp.ge.f32.partialorder %v261_v43, 0.0  ;;  %v267_v46 = vmul.f32 0.01, %v261_v43  ;;  %v755_v47 = vpop.f32.mrb[3].mxu1 }
 0x1d5   :  { %v268_v48 = vsel %vm266_vm2, %v261_v43, %v267_v46 }
 0x1d6   :  { %v269_v49 = vpack.c.bf16 %v268_v48, %v268_v48 }
 0x1d8   :  { %773 = vmatmul.mubr.bf16.vlgmr.msra.gmra.mrb[4].mxu0 %v269_v49 }
 0x1d9   :  { %812 = vmatprep.mubr.msk.bf16.mxu0 %vm863_vm0, %v862_v0  ;;  %797 = vmatpush3.bf16.msra.mxu0 %v850_v52 }
 0x1da   :  { %798 = vmatprep.subr.bf16.mxu0 %v862_v0 }
 0x1dd   :  { %799 = vmatpush3.bf16.msra.mxu0 %v851_v53 }
 0x1de   :  { %800 = vmatprep.subr.bf16.mxu0 %v862_v0 }
 0x1e1   :  { %801 = vmatpush3.bf16.msra.mxu0 %v852_v54 }
 0x1e2   :  { %802 = vmatprep.subr.bf16.mxu0 %v862_v0 }
 0x1e5   :  { %803 = vmatpush3.bf16.msra.mxu0 %v853_v55 }
 0x1e6   :  { %804 = vmatprep.subr.bf16.mxu0 %v862_v0 }
 0x1e9   :  { %805 = vmatpush3.bf16.msra.mxu0 %v854_v56 }
 0x1ea   :  { %806 = vmatprep.subr.bf16.mxu0 %v862_v0 }
 0x1ed   :  { %807 = vmatpush3.bf16.msra.mxu0 %v855_v57 }
 0x1ee   :  { %808 = vmatprep.subr.bf16.mxu0 %v862_v0 }
 0x1f1   :  { %809 = vmatpush3.bf16.msra.mxu0 %v856_v4 }
 0x1f2   :  { %810 = vmatprep.subr.bf16.mxu0 %v862_v0  ;;  %v662_v0 = vld [vmem:[%s1125_s10] ss:$0 sm:$0xff] }
 0x1f5   :  { %811 = vmatpush3.bf16.msra.mxu0 %v857_v5 }
 0x2ab   :  { %v375_v59 = vpop.f32.mrb[4].mxu0 }
 0x2ac   :  { %v376_v60 = vadd.f32 %v644_v58, %v375_v59  ;;  %v774_v61 = vpop.f32.mrb[5].mxu0 }
 0x2ad   :  { %v378_v62 = vpop.f32.mrb[6].mxu0 }
 0x2ae   :  { %vm381_vm3 = vcmp.ge.f32.partialorder %v376_v60, 0.0  ;;  %v382_v63 = vmul.f32 0.01, %v376_v60  ;;  %v775_v1 = vpop.f32.mrb[7].mxu0 }
 0x2b0   :  { %v383_v2 = vsel %vm381_vm3, %v376_v60, %v382_v63 }
 0x2b1   :  { %v384_v3 = vpack.c.bf16 %v383_v2, %v383_v2 }
 0x2b3   :  { %793 = vmatmul.mubr.bf16.vlgmr.msra.gmra.mrb[4].mxu1 %v384_v3 }
 0x386   :  { %v490_v7 = vpop.f32.mrb[4].mxu1 }
 0x387   :  { %v491_v8 = vadd.f32 %v653_v6, %v490_v7  ;;  %v794_v9 = vpop.f32.mrb[5].mxu1 }
 0x388   :  { %v493_v10 = vpop.f32.mrb[6].mxu1 }
 0x389   :  { %vm496_vm4 = vcmp.ge.f32.partialorder %v491_v8, 0.0  ;;  %v497_v11 = vmul.f32 0.01, %v491_v8  ;;  %v795_v12 = vpop.f32.mrb[7].mxu1 }
 0x38b   :  { %v498_v13 = vsel %vm496_vm4, %v491_v8, %v497_v11 }
 0x38c   :  { %v499_v14 = vpack.c.bf16 %v498_v13, %v498_v13 }
 0x38e   :  { %813 = vmatmul.mubr.bf16.vlgmr.msra.gmra.mrb[8].mxu0 %v499_v14 }
 0x461   :  { %v605_v15 = vpop.f32.mrb[8].mxu0 }
 0x462   :  { %v606_v16 = vadd.f32 %v662_v0, %v605_v15  ;;  %v814_v17 = vpop.f32.mrb[9].mxu0 }
 0x463   :  { %v608_v18 = vpop.f32.mrb[10].mxu0 }
 0x464   :  { %v611_v19 = vsub.f32 0.0, %v606_v16  ;;  %v815_v20 = vpop.f32.mrb[11].mxu0 }
 0x466   :  { %v612_v21 = vmul.f32 1.442695, %v611_v19 }
 0x468   :  { %858 = vpow2.f32 %v612_v21 }
 0x472   :  { %v859_v22 = vpop.eup %858 }
 0x473   :  { %v614_v23 = vadd.f32 1.0, %v859_v22 }
 0x475   :  { %860 = vrcp.f32 %v614_v23 }
 0x47f   :  { %v861_v26 = vpop.eup %860 }
 0x480   :  { %v620_v27 = vsel %vm619_vm5, %v861_v26, 0.0 }
 0x481   :  { %621 = vst [vmem:[%s1126_s11] sm:$0xff] %v620_v27 }

</bundles_post_ra>
